<compile_context>
chip_gen: v7x
topology: tpu7x:2x2x1
jax: 0.10.0
libtpu: 0.0.40
codegen_flags: <defaults>
</compile_context>

<pallas_src>
import jax
import jax.numpy as jnp
from jax.experimental import pallas as pl
from jax.experimental.pallas import tpu as pltpu

_HIGHEST = jax.lax.Precision.HIGHEST


def _softmax_rows(attn):
    """softmax(rowmax(attn) - attn) == softmax(-attn); stable shift = rowmin.

    Exact divide for the normalization: the epilogue is only O(C^2) per batch,
    negligible next to the O(C^2 N) matmuls, and keeps the probabilities at
    full f32 accuracy (the approx EUP reciprocal was the source of the
    previous mismatch).
    """
    m = jnp.min(attn, axis=-1, keepdims=True)
    e = jnp.exp(m - attn)
    return e / jnp.sum(e, axis=-1, keepdims=True)


# ---------------------------------------------------------------------------
# Fused kernel: one grid step per batch, x slab resident in VMEM
# ---------------------------------------------------------------------------
def _cam_fused_kernel(beta_ref, x_ref, o_ref):
    x = x_ref[...]                                    # (C, N), native dtype
    # Gram matrix x @ x^T (contract the N axis), f32 accumulation on the MXU.
    # dot_general with rhs-contracting dim 1 is the transposed-latch form; no
    # explicit XLU transpose of the (C, N) tile is required.
    attn = jax.lax.dot_general(
        x, x, (((1,), (1,)), ((), ())),
        preferred_element_type=jnp.float32, precision=_HIGHEST)
    p = _softmax_rows(attn)                           # (C, C) f32, stays in VMEM
    p_mm = p if x.dtype == jnp.float32 else p.astype(x.dtype)
    feat_e = jax.lax.dot_general(
        p_mm, x, (((1,), (0,)), ((), ())),
        preferred_element_type=jnp.float32, precision=_HIGHEST)
    o_ref[...] = (beta_ref[0] * feat_e + x.astype(jnp.float32)).astype(o_ref.dtype)


# ---------------------------------------------------------------------------
# Fallback pass 1: accumulate Gram matrix over N tiles, softmax -> P (C, C) f32
# ---------------------------------------------------------------------------
def _cam_attn_kernel(x_ref, p_ref, acc_ref):
    k = pl.program_id(1)

    @pl.when(k == 0)
    def _():
        acc_ref[...] = jnp.zeros_like(acc_ref)

    x = x_ref[...]                                    # (C, tn)
    acc_ref[...] += jax.lax.dot_general(
        x, x, (((1,), (1,)), ((), ())),
        preferred_element_type=jnp.float32, precision=_HIGHEST)

    @pl.when(k == pl.num_programs(1) - 1)
    def _():
        p_ref[...] = _softmax_rows(acc_ref[...])      # f32 probabilities


# ---------------------------------------------------------------------------
# Fallback pass 2: feat_e tile = P @ x_tile ; out = beta * feat_e + x
# ---------------------------------------------------------------------------
def _cam_apply_kernel(beta_ref, p_ref, x_ref, o_ref):
    x = x_ref[...]                                    # (C, tn)
    p = p_ref[...]                                    # (C, C) f32
    p_mm = p if x.dtype == jnp.float32 else p.astype(x.dtype)
    feat_e = jax.lax.dot_general(
        p_mm, x, (((1,), (0,)), ((), ())),
        preferred_element_type=jnp.float32, precision=_HIGHEST)
    o_ref[...] = (beta_ref[0] * feat_e + x.astype(jnp.float32)).astype(o_ref.dtype)


# ---------------------------------------------------------------------------
# Generation-aware VMEM sizing helpers
# ---------------------------------------------------------------------------
def _vmem_capacity_bytes():
    try:
        return int(pltpu.get_tpu_info().vmem_capacity_bytes)
    except Exception:
        # Conservative default (v7x per-TC VMEM); also used in interpret mode.
        return 64 << 20


def _choose_tile_n(C, n_pad, itemsize, budget):
    """Largest N-tile that is a multiple of 128, divides n_pad, fits `budget`."""
    fixed = 3 * C * C * 4                  # f32 Gram accumulator + f32 P double buffer
    per_col = 4 * C * itemsize             # x-in double buffer + out double buffer
    cap = max((budget - fixed) // per_col, 128)
    if n_pad <= cap:
        return n_pad
    t = min((cap // 128) * 128, n_pad)
    while t >= 128:
        if n_pad % t == 0:
            return t
        t -= 128
    return 128                             # n_pad is a multiple of 128 -> reachable


# ---------------------------------------------------------------------------
# Wrapper
# ---------------------------------------------------------------------------
def channel_attention_module(x, beta, *, force_two_pass=False):
    """x: (B, C, H, W); beta: (1,) f32 parameter. Returns (B, C, H, W)."""
    B, C, H, W = x.shape
    N = H * W
    x_flat = x.reshape(B, C, N)
    itemsize = jnp.dtype(x.dtype).itemsize

    capacity = _vmem_capacity_bytes()

    # ---- fused single-pass path: whole (C, N) slab resident per batch ----
    # Estimate: double-buffered x-in + out blocks, f32 feat_e/residual temps,
    # plus the (C, C) f32 attention intermediates.
    est_fused = 4 * C * N * itemsize + 2 * C * N * 4 + 4 * C * C * 4
    if not force_two_pass and est_fused <= capacity // 2:
        vmem_limit = int(min(max(est_fused * 1.4, 32 << 20), capacity * 0.92))
        cost = pl.CostEstimate(
            flops=4 * B * C * C * N,
            transcendentals=B * C * C,
            bytes_accessed=2 * B * C * N * itemsize + 4)
        out_flat = pl.pallas_call(
            _cam_fused_kernel,
            out_shape=jax.ShapeDtypeStruct((B, C, N), x.dtype),
            grid_spec=pltpu.PrefetchScalarGridSpec(
                num_scalar_prefetch=0,
                grid=(B,),
                in_specs=[
                    pl.BlockSpec(memory_space=pltpu.MemorySpace.SMEM),   # beta (1,)
                    pl.BlockSpec((pl.Squeezed(), C, N), lambda b: (b, 0, 0)),
                ],
                out_specs=pl.BlockSpec((pl.Squeezed(), C, N), lambda b: (b, 0, 0)),
            ),
            # B is the "parallel" axis: with B >= 2 both v7x TensorCores get work.
            # TODO(synk): add an N-tile parallel axis for the apply phase so a
            # B=1 call still occupies the second v7x core.
            compiler_params=pltpu.CompilerParams(
                dimension_semantics=("parallel",),
                vmem_limit_bytes=vmem_limit),
            cost_estimate=cost,
        )(beta, x_flat)
        return out_flat.reshape(B, C, H, W)

    # ---- two-pass tiled fallback (slab does not fit VMEM) ----
    n_pad = ((N + 127) // 128) * 128
    if n_pad != N:
        # Zero columns are exact: they contribute nothing to the Gram matrix and
        # the padded output columns are sliced off below.
        x_flat = jnp.pad(x_flat, ((0, 0), (0, 0), (0, n_pad - N)))

    budget = min(int(capacity * 0.55), 72 << 20)
    tn = _choose_tile_n(C, n_pad, itemsize, budget)
    nk = n_pad // tn

    est_1 = 2 * C * tn * itemsize + 3 * C * C * 4
    est_2 = 4 * C * tn * itemsize + 2 * C * C * 4
    vmem_limit = int(min(max(max(est_1, est_2) * 1.4, 32 << 20), capacity * 0.92))

    # pass 1: accumulate Gram over N tiles ("arbitrary"), softmax -> P (f32).
    attn_p = pl.pallas_call(
        _cam_attn_kernel,
        out_shape=jax.ShapeDtypeStruct((B, C, C), jnp.float32),
        grid_spec=pltpu.PrefetchScalarGridSpec(
            num_scalar_prefetch=0,
            grid=(B, nk),
            in_specs=[pl.BlockSpec((pl.Squeezed(), C, tn), lambda b, k: (b, 0, k))],
            out_specs=pl.BlockSpec((pl.Squeezed(), C, C), lambda b, k: (b, 0, 0)),
            scratch_shapes=[pltpu.VMEM((C, C), jnp.float32)],
        ),
        compiler_params=pltpu.CompilerParams(
            dimension_semantics=("parallel", "arbitrary"),
            vmem_limit_bytes=vmem_limit),
        cost_estimate=pl.CostEstimate(
            flops=2 * B * C * C * n_pad,
            transcendentals=B * C * C,
            bytes_accessed=B * C * n_pad * itemsize + B * C * C * 4),
    )(x_flat)

    # pass 2: feat_e tile = P @ x_tile ; out = beta * feat_e + x.
    # P's block index is constant over k, so Pallas keeps it resident in VMEM
    # (no per-k re-DMA of the (C, C) block).
    out_flat = pl.pallas_call(
        _cam_apply_kernel,
        out_shape=jax.ShapeDtypeStruct((B, C, n_pad), x.dtype),
        grid_spec=pltpu.PrefetchScalarGridSpec(
            num_scalar_prefetch=0,
            grid=(B, nk),
            in_specs=[
                pl.BlockSpec(memory_space=pltpu.MemorySpace.SMEM),             # beta
                pl.BlockSpec((pl.Squeezed(), C, C), lambda b, k: (b, 0, 0)),   # P
                pl.BlockSpec((pl.Squeezed(), C, tn), lambda b, k: (b, 0, k)),  # x tile
            ],
            out_specs=pl.BlockSpec((pl.Squeezed(), C, tn), lambda b, k: (b, 0, k)),
        ),
        compiler_params=pltpu.CompilerParams(
            dimension_semantics=("parallel", "parallel"),
            vmem_limit_bytes=vmem_limit),
        cost_estimate=pl.CostEstimate(
            flops=2 * B * C * C * n_pad,
            transcendentals=0,
            bytes_accessed=B * (2 * C * n_pad * itemsize + C * C * 4)),
    )(beta, attn_p, x_flat)

    return out_flat[:, :, :N].reshape(B, C, H, W)


# ---------------------------------------------------------------------------
# Pure-JAX reference (f32 math, HIGHEST-precision matmuls)
# ---------------------------------------------------------------------------
def _reference(x, beta):
    B, C, H, W = x.shape
    N = H * W
    fa = x.reshape(B, C, N).astype(jnp.float32)
    attn = jnp.einsum("bcn,bdn->bcd", fa, fa, precision=_HIGHEST)
    attn_new = jnp.max(attn, axis=-1, keepdims=True) - attn
    attn = jax.nn.softmax(attn_new, axis=-1)
    feat_e = jnp.einsum("bcd,bdn->bcn", attn, fa,
                        precision=_HIGHEST).reshape(B, C, H, W)
    return (beta[0] * feat_e + x.astype(jnp.float32)).astype(x.dtype)


if __name__ == "__main__":
    key = jax.random.PRNGKey(0)
    B, C, H, W = 2, 8, 16, 16
    # 0.1 scale keeps the Gram logits O(1) so the (otherwise extremely sharp)
    # shifted softmax is numerically well conditioned for the f32 comparison.
    x = 0.1 * jax.random.normal(key, (B, C, H, W), dtype=jnp.float32)

    beta_zero = jnp.zeros((1,), dtype=jnp.float32)      # parameter init (torch.zeros(1))
    beta_half = jnp.full((1,), 0.5, dtype=jnp.float32)  # exercises the attention path

    for beta in (beta_zero, beta_half):
        ref = _reference(x, beta)

        out = channel_attention_module(x, beta)
        jax.block_until_ready(out)
        assert jnp.allclose(out, ref, rtol=2e-3, atol=2e-3), \
            f"fused path mismatch (beta={float(beta[0])})"

        out2 = channel_attention_module(x, beta, force_two_pass=True)
        jax.block_until_ready(out2)
        assert jnp.allclose(out2, ref, rtol=2e-3, atol=2e-3), \
            f"two-pass path mismatch (beta={float(beta[0])})"

    print("KERNEL_OK")
</pallas_src>

<mosaic_0001>
module attributes {stable_mosaic.version = 11 : i64} {
  func.func @_cam_fused_kernel(%arg0: i32, %arg1: memref<1xf32, #tpu.memory_space<smem>>, %arg2: memref<1x8x256xf32, #tpu.memory_space<vmem>>, %arg3: memref<1x8x256xf32, #tpu.memory_space<vmem>>) attributes {dimension_semantics = [#tpu.dimension_semantics<parallel>], iteration_bounds = array<i64: 2>, scalar_prefetch = 0 : i64, scratch_operands = 0 : i64, tpu.core_type = #tpu.core_type<tc>, window_params = [{transform_indices = @transform_0, window_bounds = array<i64: 1>}, {transform_indices = @transform_1, window_bounds = array<i64: 1, 8, 256>}, {transform_indices = @transform_2, window_bounds = array<i64: 1, 8, 256>}]} {
    %c0 = arith.constant 0 : index
    %c0_0 = arith.constant 0 : index
    %c0_1 = arith.constant 0 : index
    %0 = vector.load %arg2[%c0, %c0_0, %c0_1] : memref<1x8x256xf32, #tpu.memory_space<vmem>>, vector<1x8x256xf32>
    %1 = vector.shape_cast %0 : vector<1x8x256xf32> to vector<8x256xf32>
    %cst = arith.constant dense<0.000000e+00> : vector<8x8xf32>
    %2 = tpu.matmul %1, %1, %cst {dimension_numbers = #tpu.dot_dimension_numbers<[1], [1], [0], [0], [0, 0, 1, 0], [], []>, precision = #tpu.contract_precision<fp32>} : vector<8x256xf32>, vector<8x256xf32>, vector<8x8xf32> -> vector<8x8xf32>
    %cst_2 = arith.constant dense<0x7F800000> : vector<8xf32>
    %3 = vector.multi_reduction <minimumf>, %2, %cst_2 [1] : vector<8x8xf32> to vector<8xf32>
    %4 = vector.shape_cast %3 : vector<8xf32> to vector<8x1xf32>
    %5 = vector.broadcast %4 : vector<8x1xf32> to vector<8x8xf32>
    %6 = arith.subf %5, %2 : vector<8x8xf32>
    %7 = math.exp %6 : vector<8x8xf32>
    %cst_3 = arith.constant dense<0.000000e+00> : vector<8xf32>
    %8 = vector.multi_reduction <add>, %7, %cst_3 [1] : vector<8x8xf32> to vector<8xf32>
    %9 = vector.shape_cast %8 : vector<8xf32> to vector<8x1xf32>
    %10 = vector.broadcast %9 : vector<8x1xf32> to vector<8x8xf32>
    %11 = arith.divf %7, %10 : vector<8x8xf32>
    %cst_4 = arith.constant dense<0.000000e+00> : vector<8x256xf32>
    %12 = tpu.matmul %11, %1, %cst_4 {dimension_numbers = #tpu.dot_dimension_numbers<[1], [0], [0], [1], [0, 0, 1, 1], [], []>, precision = #tpu.contract_precision<fp32>} : vector<8x8xf32>, vector<8x256xf32>, vector<8x256xf32> -> vector<8x256xf32>
    %c0_5 = arith.constant 0 : index
    %13 = memref.load %arg1[%c0_5] : memref<1xf32, #tpu.memory_space<smem>>
    %14 = vector.broadcast %13 : f32 to vector<8x256xf32>
    %15 = arith.mulf %14, %12 : vector<8x256xf32>
    %16 = arith.addf %15, %1 : vector<8x256xf32>
    %c0_6 = arith.constant 0 : index
    %c0_7 = arith.constant 0 : index
    %c0_8 = arith.constant 0 : index
    %17 = vector.load %arg3[%c0_6, %c0_7, %c0_8] : memref<1x8x256xf32, #tpu.memory_space<vmem>>, vector<1x8x256xf32>
    %18 = vector.shape_cast %17 : vector<1x8x256xf32> to vector<8x256xf32>
    %19 = vector.shape_cast %16 : vector<8x256xf32> to vector<1x8x256xf32>
    tpu.vector_store %arg3[%c0_6, %c0_7, %c0_8], %19 {strides = array<i32>} : memref<1x8x256xf32, #tpu.memory_space<vmem>>, vector<1x8x256xf32>,
    return
  }
  func.func @transform_0(%arg0: i32) -> i32 {
    %c0_i32 = arith.constant 0 : i32
    %c0_i32_0 = arith.constant 0 : i32
    return %c0_i32 : i32
  }
  func.func @transform_1(%arg0: i32) -> (i32, i32, i32) {
    %c0_i32 = arith.constant 0 : i32
    %c0_i32_0 = arith.constant 0 : i32
    %c0_i32_1 = arith.constant 0 : i32
    return %arg0, %c0_i32, %c0_i32_0 : i32, i32, i32
  }
  func.func @transform_2(%arg0: i32) -> (i32, i32, i32) {
    %c0_i32 = arith.constant 0 : i32
    %c0_i32_0 = arith.constant 0 : i32
    %c0_i32_1 = arith.constant 0 : i32
    return %arg0, %c0_i32, %c0_i32_0 : i32, i32, i32
  }
}

</mosaic_0001>

<bundles_post_ra>
// kernel: tpu_custom_call.1
= control target key start
LH: loop header
LB: loop body
LE: loop exit
PB: predicated region body
PF: predicated region fallthrough
CT: control target
= control target key end

     0   :  { %s1628_s0 = inlined_call_operand.<no memory space> [shape: f32[1], index: 0, kind: input, shape index: {}]   ;;  %s1629_s1 = inlined_call_operand.hbm [shape: f32[2,8,256], index: 1, kind: input, shape index: {}]   ;;  %s1630_s2 = inlined_call_operand.hbm [shape: f32[2,8,256], index: 2, kind: output, shape index: {}]  }
   0x1   :  { %7 = sst [smem:[#allocation2]] %s1628_s0 }
   0x2   :  { %8 = vsyncpa [#allocation4], 0 }
   0x3   :  { %10 = vsyncpa [#allocation4 + $0x1], 0 }
   0x4   :  { %11 = vsyncpa [#allocation5], 0 }
   0x5   :  { %13 = vsyncpa [#allocation5 + $0x1], 0  ;;  %s1414_s11 = smov 0   ;;  %s1416_s12 = smov 0  }
   0x6   :  { %s1418_s13 = smov 0   ;;  %s1420_s14 = smov 0  }
   0x7 LB: > { %s1435_s0 = sadd.s32 4294967295, %s1391_s14   ;;  %s1208_s15 = sadd.s32 4294967294, %s1391_s14   ;;  %s1391_s14 = sphi %s1420_s14, %s1645_s14   ;;  %s1387_s13 = sphi %s1418_s13, %s1644_s13   ;;  %s1383_s12 = sphi %s1416_s12, %s1643_s12   ;;  %s1379_s11 = sphi %s1414_s11, %s1642_s11  }
   0x8   : > { %s1439_s16 = sadd.s32 1, %s1391_s14   ;;  %s47_s17 = sadd.s32 1, %s1387_s13 }
   0x9   : > { %s44_s18 = ssub.s32 %s1391_s14, %s1439_s16  ;;  %p54_p0 = scmp.ne.s32.totalorder %s1387_s13, %s1383_s12 }
   0xa   : > { %p45_p1 = scmp.eq.s32.totalorder %s44_s18, 0  ;;  %p55_p2 = scmp.eq.s32.totalorder %s1391_s14, 0 }
   0xb   : > { %p60_p3 = scmp.ne.s32.totalorder %s1383_s12, %s1379_s11  ;;  %p61_p4 = scmp.eq.s32.totalorder %s1435_s0, 0 }
   0xc   : > { %s1451_s19 = scalar_select %p45_p1, %s1387_s13, %s47_s17  }
   0xd   : > { %p1453_p5 = por %p55_p2, %p54_p0  ;;  %p1457_p6 = por %p61_p4, %p60_p3 }
   0xe   : > { %p84_p7 = scmp.eq.s32.totalorder %s1435_s0, 1  ;;  %p90_p8 = scmp.eq.s32.totalorder %s1208_s15, 1 }
   0xf   : > { %p1256_p10 = scmp.lt.s32.totalorder %s1391_s14, 2  ;;  %s113_s24 = sand.u32 1, %s1387_s13  }
  0x10   : > { %p1464_p11 = por %p84_p7, %p54_p0  ;;  %p1468_p12 = por %p90_p8, %p60_p3 }
  0x11   : > { %s1222_s25 = sshll.u32 %s1391_s14, 8  ;;  %s1211_s26 = sshll.u32 %s113_s24, 4 }
  0x12   : > { %s1634_s22 = scalar_select %p1464_p11, 1, 0 }
  0x13   : > { %s1635_s23 = scalar_select %p1468_p12, 1, 0 }
  0x14   : > { %s1477_s29 = scalar_lea.hbm %s1629_s1, %s1222_s25  ;;  %s117_s30 = scalar_lea.vmem [#allocation3], %s1211_s26 }
  0x15   : > { %s125_s3 = sshll.u32 %s117_s30, 4  ;;  %p1481_p13 = pnand %p1256_p10, %p1453_p5  ;;  %s1485_s3 = int_to_ptr.vmem [resolvable:$true] %s125_s3 }
  0x16   : > { %s114_s5 = scalar_lea.sflag [#allocation4], %s113_s24  ;;  %s1295_s6 = scalar_lea.hbm %s1477_s29, 256 }
  0x17   : > { %p1296_p2 = scmp.ne.s32.totalorder %s1477_s29, %s1295_s6  ;;  %p1297_p3 = pneg %p1481_p13 }
  0x18   : > { %s1300_s9 = scalar_lea.hbm %s1629_s1, 512  ;;  %p1301_p5 = scmp.lt.u32.totalorder %s1477_s29, %s1629_s1 }
  0x19   : > { %p1298_p4 = pnand %p1297_p3, %p1296_p2  ;;  %p1302_p8 = scmp.lt.u32.totalorder %s1300_s9, %s1295_s6 }
  0x1a   : > { %p1304_p9 = scmp.lt.u32.totalorder %s1295_s6, %s1477_s29 }
  0x1b   : > { %p1299_p7 = pneg %p1298_p4  ;;  %p1303_p10 = por %p1302_p8, %p1301_p5 }
  0x1d   : > { %p1305_p0 = por %p1304_p9, %p1303_p10 }
  0x1f   : > { %p1306_p1 = pnand %p1305_p0, %p1299_p7 }
  0x21   : > { %1309 = shalt.err (!%p1306_p1)
}
  0x22   : > { %s1310_s17 = scalar_lea.vmem %s1485_s3, 256  ;;  %s1393_s18 = smov [#allocation3]  }
  0x23   : > { %p1311_p2 = scmp.ne.s32.totalorder %s1485_s3, %s1310_s17  ;;  %s1315_s20 = sshll.u32 %s1393_s18, 4  ;;  %s1316_s20 = int_to_ptr.vmem [resolvable:$false] %s1315_s20 }
  0x24   : > { %s1317_s24 = scalar_lea.vmem %s1316_s20, 512  ;;  %p1318_p11 = scmp.lt.s32.totalorder %s1485_s3, %s1316_s20 }
  0x25   : > { %p1313_p4 = pnand %p1311_p2, %p1297_p3  ;;  %p1319_p5 = scmp.lt.s32.totalorder %s1317_s24, %s1310_s17 }
  0x27   : > { %p1314_p12 = pneg %p1313_p4  ;;  %p1320_p8 = por %p1319_p5, %p1318_p11 }
  0x29   : > { %p1321_p9 = pnand %p1320_p8, %p1314_p12 }
  0x2b   : > { %1324 = shalt.err (!%p1321_p9)
}
  0x2c   : > { %1251 = dma.hbm_to_vmem [thread:$0]  (!%p1481_p13), %s1477_s29, 256, %s1485_s3, %s114_s5  }
  0x2d   : > { %p1637_p0 = scmp.lt.s32.totalorder %s1391_s14, 3  ;;  %p1638_p1 = scmp.ge.s32.totalorder %s1391_s14, 1 }
  0x2f   : > { %p131_p3 = pnand %p1638_p1, %p1637_p0 }
  0x30   : > { %s1519_s25 = sand.u32 (!%p131_p3), 1, %s1383_s12  }
  0x31   : > { %134 = sbr.rel (%p131_p3) target bundleno = 917 (0x395), region = 28  ;;  %s1215_s26 = sshll.u32 (!%p131_p3), %s1519_s25, 4 }
  0x32   : > { %s137_s27 = scalar_lea.sflag (!%p131_p3), [#allocation4], %s1519_s25  ;;  %s140_s28 = scalar_lea.vmem (!%p131_p3), [#allocation3], %s1215_s26 }
  0x38   : > { %1370 = dma.done.wait (%p1457_p6), %s137_s27, 256  }
  0x39   : > { %1372 = vsyncadd (%p1457_p6), %s137_s27, 4294967040  ;;  %v1529_v0 = vld [vmem:[%s140_s28 + $0x8] sm:$0xff]  ;;  %v1531_v1 = vld [vmem:[%s140_s28] sm:$0xff]  ;;  %vm635_vm0 = vcmask 64512   ;;  %v1394_v20 = vmov 0.0   ;;  %s1115_s21 = sld [smem:[#allocation2]] }
  0x3a   : > { %v1534_v2 = vand.u32 4294901760, %v1529_v0  ;;  %v1537_v3 = vand.u32 4294901760, %v1531_v1  ;;  %716 = vmatprep.mubr.f32.mxu1 %v1394_v20  ;;  %s1223_s29 = sshll.u32 %s1435_s0, 8  ;;  %s160_s30 = scalar_lea.vmem [#allocation6], %s1215_s26 }
  0x3b   : > { %s1138_s3 = sshll.u32 %s160_s30, 4  ;;  %s1584_s6 = scalar_lea.hbm %s1630_s2, %s1223_s29  ;;  %s1586_s3 = int_to_ptr.vmem [resolvable:$true] %s1138_s3 }
  0x3c   : > { %164 = vmatprep.subr.mxu0 %v1534_v2  ;;  %v230_v4 = vsub.f32 %v1529_v0, %v1534_v2  ;;  %v236_v5 = vsub.f32 %v1531_v1, %v1537_v3  ;;  %651 = vmatprep.subr.mxu1 %v1534_v2  ;;  %s1124_s0 = scalar_lea.sflag [#allocation5], %s1519_s25  ;;  %s1325_s7 = scalar_lea.vmem %s1586_s3, 256 }
  0x3d   : > { %166 = vmatpush1.xpose.msra.mxu0 %v1537_v3  ;;  %653 = vmatpush1.msra.mxu1 %v1537_v3  ;;  %p1326_p6 = scmp.ne.s32.totalorder %s1586_s3, %s1325_s7  ;;  %p1639_p11 = scmp.ne.s32.totalorder %s1634_s22, 0 }
  0x3e   : > { %v1547_v6 = vand.u32 4294901760, %v230_v4  ;;  %v1549_v7 = vand.u32 4294901760, %v236_v5  ;;  %s1395_s8 = smov [#allocation6]  }
  0x3f   : > { %v1116_v30 = vstv %s1115_s21  ;;  %p1327_p12 = pnand %p1326_p6, %p1639_p11  ;;  %s1329_s9 = sshll.u32 %s1395_s8, 4  ;;  %s1330_s9 = int_to_ptr.vmem [resolvable:$false] %s1329_s9 }
  0x40   : > { %v232_v8 = vsub.f32 %v230_v4, %v1547_v6  ;;  %v238_v9 = vsub.f32 %v236_v5, %v1549_v7  ;;  %s1331_s10 = scalar_lea.vmem %s1330_s9, 512  ;;  %p1332_p7 = scmp.lt.s32.totalorder %s1586_s3, %s1330_s9 }
  0x41   : > { %p1328_p13 = pneg %p1327_p12  ;;  %p1333_p10 = scmp.lt.s32.totalorder %s1331_s10, %s1325_s7 }
  0x42   : > { %v233_v10 = vand.u32 4294901760, %v232_v8  ;;  %v239_v11 = vand.u32 4294901760, %v238_v9 }
  0x43   : > { %p1334_p2 = por %p1333_p10, %p1332_p7 }
  0x44   : > { %234 = vmatprep.mubr.f32.mxu0 %v233_v10  ;;  %250 = vmatprep.subr.mxu0 %v233_v10 }
  0x45   : > { %240 = vmatmul.mubr.f32.vlgmr.msra.gmra.mrb[0].mxu0 %v239_v11  ;;  %733 = vmatprep.subr.mxu1 %v233_v10  ;;  %p1335_p4 = pnand %p1334_p2, %p1328_p13 }
  0x46   : > { %256 = vmatpush1.xpose.msra.mxu0 %v239_v11  ;;  %320 = vmatprep.mubr.f32.mxu0 %v1534_v2 }
  0x47   : > { %329 = vmatprep.subr.mxu0 %v230_v4 }
  0x4d   : > { %322 = vmatmul.mubr.f32.vlgmr.msra.gmra.mrb[0].mxu0 %v1537_v3 }
  0x4e   : > { %332 = vmatpush1.xpose.msra.mxu0 %v236_v5  ;;  %397 = vmatprep.mubr.f32.mxu0 %v230_v4 }
  0x4f   : > { %406 = vmatprep.subr.mxu0 %v1534_v2 }
  0x55   : > { %400 = vmatmul.mubr.f32.vlgmr.msra.gmra.mrb[0].mxu0 %v236_v5 }
  0x56   : > { %408 = vmatpush1.xpose.msra.mxu0 %v1537_v3  ;;  %474 = vmatprep.mubr.f32.mxu0 %v1547_v6 }
  0x57   : > { %486 = vmatprep.subr.mxu0 %v1547_v6 }
  0x5d   : > { %478 = vmatmul.mubr.f32.vlgmr.msra.gmra.mrb[0].mxu0 %v1549_v7 }
  0x5e   : > { %490 = vmatpush1.xpose.msra.mxu0 %v1549_v7  ;;  %554 = vmatprep.mubr.f32.mxu0 %v1534_v2 }
  0x5f   : > { %562 = vmatprep.subr.mxu0 %v1534_v2 }
  0x65   : > { %556 = vmatmul.mubr.f32.vlgmr.msra.gmra.mrb[0].mxu0 %v1537_v3 }
  0x66   : > { %564 = vmatpush1.xpose.msra.mxu0 %v1537_v3  ;;  %628 = vmatprep.mubr.f32.mxu0 %v1534_v2 }
  0x6d   : > { %630 = vmatmul.mubr.f32.vlgmr.msra.gmra.mrb[0].mxu0 %v1537_v3 }
 0x140   : > { %v631_v12 = vpop.f32.mrb[0].mxu0 }
 0x141   : > { %v633_v13 = vpop.f32.mrb[1].mxu0  ;;  %v636_v14 = vsel %vm635_vm0, %v631_v12, inf }
 0x142   : > { %637 = vmin.xlane.f32.xlu0 %v636_v14 }
 0x1cf   : > { %v638_v15 = vpop.xlane.xlu0 %637 }
 0x1d0   : > { %v639_v16 = vsub.f32 %v638_v15, %v631_v12 }
 0x1d2   : > { %v640_v17 = vmul.f32 1.442695, %v639_v16 }
 0x1d4   : > { %1291 = vpow2.f32 %v640_v17 }
 0x1de   : > { %v1292_v18 = vpop.eup %1291 }
 0x1df   : > { %v642_v19 = vsel %vm635_vm0, %v1292_v18, 0.0 }
 0x1e0   : > { %643 = vadd.xlane.f32.xlu0 %v642_v19 }
 0x26d   : > { %v644_v21 = vpop.xlane.xlu0 %643 }
 0x26e   : > { %1293 = vrcp.f32 %v644_v21 }
 0x278   : > { %v1294_v22 = vpop.eup %1293 }
 0x279   : > { %v646_v23 = vmul.f32 %v1294_v22, %v1292_v18 }
 0x27b   : > { %v648_v24 = vsel %vm635_vm0, %v646_v23, 0 }
 0x27c   : > { %v717_v25 = vand.u32 4294901760, %v648_v24 }
 0x27e   : > { %v718_v26 = vsub.f32 %v648_v24, %v717_v25 }
 0x280   : > { %v719_v27 = vand.u32 4294901760, %v718_v26 }
 0x282   : > { %v720_v28 = vsub.f32 %v718_v26, %v719_v27 }
 0x284   : > { %v721_v29 = vand.u32 4294901760, %v720_v28 }
 0x286   : > { %722 = vmatmul.mubr.f32.vlgmr.msra.gmra.mrb[0].mxu1 %v721_v29 }
 0x287   : > { %739 = vmatpush1.msra.mxu1 %v239_v11  ;;  %802 = vmatprep.mubr.f32.mxu1 %v1394_v20 }
 0x288   : > { %812 = vmatprep.subr.mxu1 %v230_v4 }
 0x28e   : > { %804 = vmatmul.mubr.f32.vlgmr.msra.gmra.mrb[0].mxu1 %v717_v25 }
 0x28f   : > { %815 = vmatpush1.msra.mxu1 %v236_v5  ;;  %878 = vmatprep.mubr.f32.mxu1 %v1394_v20 }
 0x290   : > { %888 = vmatprep.subr.mxu1 %v1534_v2 }
 0x296   : > { %881 = vmatmul.mubr.f32.vlgmr.msra.gmra.mrb[0].mxu1 %v718_v26 }
 0x297   : > { %890 = vmatpush1.msra.mxu1 %v1537_v3  ;;  %953 = vmatprep.mubr.f32.mxu1 %v1394_v20 }
 0x298   : > { %966 = vmatprep.subr.mxu1 %v1547_v6 }
 0x29e   : > { %957 = vmatmul.mubr.f32.vlgmr.msra.gmra.mrb[0].mxu1 %v719_v27 }
 0x29f   : > { %970 = vmatpush1.msra.mxu1 %v1549_v7  ;;  %1033 = vmatprep.mubr.f32.mxu1 %v1394_v20 }
 0x2a0   : > { %1042 = vmatprep.subr.mxu1 %v1534_v2 }
 0x2a6   : > { %1035 = vmatmul.mubr.f32.vlgmr.msra.gmra.mrb[0].mxu1 %v717_v25 }
 0x2a7   : > { %1044 = vmatpush1.msra.mxu1 %v1537_v3  ;;  %1107 = vmatprep.mubr.f32.mxu1 %v1394_v20 }
 0x2ae   : > { %1109 = vmatmul.mubr.f32.vlgmr.msra.gmra.mrb[0].mxu1 %v717_v25 }
 0x381   : > { %v1110_v31 = vpop.f32.mrb[0].mxu1 }
 0x382   : > { %v1117_v32 = vmul.f32 %v1116_v30, %v1110_v31  ;;  %v1112_v33 = vpop.f32.mrb[1].mxu1 }
 0x383   : > { %v1118_v34 = vmul.f32 %v1116_v30, %v1112_v33 }
 0x384   : > { %v1119_v35 = vadd.f32 %v1117_v32, %v1531_v1 }
 0x385   : > { %v1120_v36 = vadd.f32 %v1118_v34, %v1529_v0 }
 0x386   : > { %1121 = vst [vmem:[%s160_s30] sm:$0xff] %v1119_v35 }
 0x387   : > { %1122 = vst [vmem:[%s160_s30 + $0x8] sm:$0xff] %v1120_v36 }
 0x388   : > { %1338 = shalt.err (!%p1335_p4)
}
 0x389   : > { %s1339_s15 = scalar_lea.hbm %s1584_s6, 256  ;;  %s1343_s20 = scalar_lea.hbm %s1630_s2, 512 }
 0x38a   : > { %p1340_p5 = scmp.ne.s32.totalorder %s1584_s6, %s1339_s15  ;;  %p1344_p0 = scmp.lt.u32.totalorder %s1584_s6, %s1630_s2 }
 0x38b   : > { %p1345_p1 = scmp.lt.u32.totalorder %s1343_s20, %s1339_s15  ;;  %p1347_p6 = scmp.lt.u32.totalorder %s1339_s15, %s1584_s6 }
 0x38c   : > { %p1341_p8 = pnand %p1340_p5, %p1639_p11 }
 0x38d   : > { %p1346_p3 = por %p1345_p1, %p1344_p0 }
 0x38e   : > { %p1342_p9 = pneg %p1341_p8 }
 0x38f   : > { %p1348_p12 = por %p1347_p6, %p1346_p3 }
 0x391   : > { %p1349_p13 = pnand %p1348_p12, %p1342_p9 }
 0x393   : > { %1352 = shalt.err (!%p1349_p13)
}
 0x394   : > { %1246 = dma.vmem_to_hbm [thread:$0]  (%p1639_p11), %s1586_s3, 256, %s1584_s6, %s1124_s0  }
 0x395 PF: > { %s1150_s26 = sand.u32 1, %s1379_s11   ;;  %p1640_p7 = scmp.ne.s32.totalorder %s1635_s23, 0 }
 0x396   : > { %p1641_p10 = scmp.ge.s32.totalorder %s1391_s14, 2  ;;  %s1151_s27 = scalar_lea.sflag [#allocation5], %s1150_s26 }
 0x398   : > { %p1253_p2 = pnand %p1641_p10, %p1640_p7 }
 0x39a   : > { %1374 = dma.done.wait (!%p1253_p2), %s1151_s27, 256  }
 0x39b   : > { %1376 = vsyncadd (!%p1253_p2), %s1151_s27, 4294967040  ;;  %p16_p4 = scmp.ge.s32.totalorder %s1439_s16, 4   ;;  %s1642_s11 = smov %s1383_s12 }
 0x39c   : > { %s1643_s12 = smov %s1387_s13  ;;  %s1644_s13 = smov %s1451_s19 }
 0x39d   : > { %s1645_s14 = smov %s1439_s16  ;;  %18 = sbr.rel (!%p16_p4) target bundleno = 7 (0x7), region = 73 }
 0x3a4   :  { %1156 = vsyncpa [#allocation4], 1 }
 0x3a5   :  { %1158 = vsyncpa [#allocation4 + $0x1], 1 }
 0x3a6   :  { %1159 = vsyncpa [#allocation5], 1 }
 0x3a7   :  { %1161 = vsyncpa [#allocation5 + $0x1], 1 }

</bundles_post_ra>
